<compile_context>
chip_gen: v5e
topology: v5e:2x2
jax: 0.10.0
libtpu: 0.0.40
codegen_flags: <defaults>
</compile_context>

<pallas_src>
import jax
import jax.numpy as jnp
from jax.experimental import pallas as pl
from jax.experimental.pallas import tpu as pltpu


# ----------------------------------------------------------------------------
# Fused Pallas kernel
# ----------------------------------------------------------------------------

def chebnet_fused_kernel(l_ref, x_ref,
                         wx0_ref, wl0_ref, b0_ref,
                         wx1_ref, wl1_ref, b1_ref,
                         wx2_ref, wl2_ref, b2_ref,
                         hw1_ref, hb1_ref, hw2_ref, hb2_ref, hw3_ref, hb3_ref,
                         o_ref, feat_ref):
    """Entire ChebNet forward for one (small) batch, fully VMEM-resident.

    l_ref:    (N, N)       scaled Laplacian (self-loops of -0.05 and *2 included)
    x_ref:    (B*N, C0)    input node features, batch folded into rows
    wx*_ref:  (Cin, Cout)  folded Chebyshev weight  W0 - W2     (per layer)
    wl*_ref:  (Cin, Cout)  folded Chebyshev weight  W1 + 2*W2   (per layer)
    b*_ref:   (1, Cout)    ChebConv bias            (per layer)
    hw/hb:    MLP head     Linear(N, nhid) -> Linear(nhid, nhid//4) -> Linear(., nclass)
    o_ref:    (B, nclass)  logits
    feat_ref: (B, N, Cf)   VMEM scratch used to do the channel-max pool as a lane reduce
    """
    B, N, _ = feat_ref.shape
    L = l_ref[...]                                       # (N, N)

    def cheb_layer(h, wx_ref, wl_ref, b_ref):
        # h: (B*N, Cin).  L@x applied per static batch slice; weight matmuls on
        # the full (B*N, Cin) slab (batch folded into the MXU M dimension).
        lx = jnp.concatenate(
            [jnp.dot(L, h[b * N:(b + 1) * N, :],
                     preferred_element_type=jnp.float32)
             for b in range(B)],
            axis=0)                                      # (B*N, Cin)
        out = (jnp.dot(h, wx_ref[...], preferred_element_type=jnp.float32)
               + jnp.dot(lx, wl_ref[...], preferred_element_type=jnp.float32)
               + b_ref[...])
        return jnp.maximum(out, 0.0)                     # fused ReLU

    h = x_ref[...]                                       # (B*N, C0)
    h = cheb_layer(h, wx0_ref, wl0_ref, b0_ref)
    h = cheb_layer(h, wx1_ref, wl1_ref, b1_ref)
    h = cheb_layer(h, wx2_ref, wl2_ref, b2_ref)          # (B*N, Cf)

    # AdaptiveMaxPool2d((N, 1)) + view(B, -1)  ==  max over the channel axis -> (B, N)
    for b in range(B):
        feat_ref[b] = h[b * N:(b + 1) * N, :]
    pooled = jnp.max(feat_ref[...], axis=-1)             # (B, N)

    # hidden2label MLP (dropouts are identity in eval mode)
    z = jnp.dot(pooled, hw1_ref[...], preferred_element_type=jnp.float32) + hb1_ref[...]
    z = jnp.maximum(z, 0.0)
    z = jnp.dot(z, hw2_ref[...], preferred_element_type=jnp.float32) + hb2_ref[...]
    z = jnp.maximum(z, 0.0)
    o_ref[...] = jnp.dot(z, hw3_ref[...], preferred_element_type=jnp.float32) + hb3_ref[...]


# ----------------------------------------------------------------------------
# Wrappers
# ----------------------------------------------------------------------------

def _full_spec(shape):
    """Whole-array-in-VMEM BlockSpec for a single-grid-point kernel."""
    zeros = (0,) * len(shape)
    return pl.BlockSpec(shape, lambda i, _z=zeros: _z)


def build_scaled_laplacian(adj):
    """Dense equivalent of the reference edge-list computation.

    deg = row-sum of weights; deg^-1/2 (inf -> 0);
    lap[i,j] = -deg_is[i] * A[i,j] * deg_is[j]; add self-loops of -0.05; *2.
    """
    deg = jnp.sum(adj, axis=1)
    deg_is = jnp.where(deg > 0, 1.0 / jnp.sqrt(deg), 0.0)
    lap = -(deg_is[:, None] * adj * deg_is[None, :])
    lap = lap + (-0.05) * jnp.eye(adj.shape[0], dtype=adj.dtype)
    return 2.0 * lap


def chebnet_forward(inputs, adj, cheb_params, mlp_params):
    """inputs: (B, N, nfeat); adj: dense (N, N) weighted adjacency (zero diagonal)."""
    B, N, C0 = inputs.shape
    assert len(cheb_params) == 3, "kernel is specialized for 1 + gcn_layer = 3 ChebConv layers"

    L = build_scaled_laplacian(adj)

    # Fold the three Chebyshev weight matrices of each layer into two:
    #   x@W0 + (Lx)@W1 + (2Lx - x)@W2 == x@(W0 - W2) + (Lx)@(W1 + 2*W2)
    layer_args = []
    nfilters = None
    for (w, b) in cheb_params:
        assert w.shape[0] == 3, "kernel is specialized for K=2 (3 Chebyshev terms)"
        layer_args += [w[0] - w[2], w[1] + 2.0 * w[2], b]
        nfilters = w.shape[2]

    hw1, hb1, hw2, hb2, hw3, hb3 = mlp_params
    nclass = hw3.shape[1]

    x2d = inputs.reshape(B * N, C0)                      # batch folded into rows
    args = [L, x2d] + layer_args + [hw1, hb1, hw2, hb2, hw3, hb3]

    return pl.pallas_call(
        chebnet_fused_kernel,
        out_shape=jax.ShapeDtypeStruct((B, nclass), jnp.float32),
        grid=(1,),
        in_specs=[_full_spec(a.shape) for a in args],
        out_specs=_full_spec((B, nclass)),
        scratch_shapes=[pltpu.VMEM((B, N, nfilters), jnp.float32)],
        compiler_params=pltpu.CompilerParams(dimension_semantics=("arbitrary",)),
    )(*args)


# ----------------------------------------------------------------------------
# Pure-JAX reference (literal 3-term Chebyshev form) for a numerical sanity check
# ----------------------------------------------------------------------------

def reference_forward(inputs, adj, cheb_params, mlp_params):
    L = build_scaled_laplacian(adj)
    x = inputs
    for (w, b) in cheb_params:
        tx1 = jnp.einsum('nm,bmc->bnc', L, x)
        tx2 = 2.0 * tx1 - x
        out = x @ w[0] + tx1 @ w[1] + tx2 @ w[2] + b
        x = jnp.maximum(out, 0.0)
    pooled = jnp.max(x, axis=-1)
    w1, b1, w2, b2, w3, b3 = mlp_params
    h = jnp.maximum(pooled @ w1 + b1, 0.0)
    h = jnp.maximum(h @ w2 + b2, 0.0)
    return h @ w3 + b3


# ----------------------------------------------------------------------------
# Deterministic parameter init + example run
# ----------------------------------------------------------------------------

def kaiming_normal(key, shape, fan_in):
    std = (2.0 / fan_in) ** 0.5
    return std * jax.random.normal(key, shape, dtype=jnp.float32)


if __name__ == "__main__":
    # Small, forward-consistent shapes (hidden_size of the head == nodes).
    batch = 2
    nodes = 16
    nfeat = 8
    nfilters = 16
    nclass = 3
    nhid = 32
    gcn_layer = 2     # -> 1 + gcn_layer = 3 ChebConv layers
    K = 2             # each ChebConv holds K+1 = 3 weight matrices

    key = jax.random.PRNGKey(0)
    keys = jax.random.split(key, 12)

    # Inputs (B, N, nfeat) and dense weighted adjacency (N, N) with zero diagonal.
    inputs = jax.random.normal(keys[0], (batch, nodes, nfeat), dtype=jnp.float32)
    adj = jax.random.uniform(keys[1], (nodes, nodes), dtype=jnp.float32)
    adj = adj * (1.0 - jnp.eye(nodes, dtype=jnp.float32))

    # ChebConv parameters: weight (K+1, Cin, Cout), bias zeros (as in reference init).
    cheb_params = []
    cins = [nfeat] + [nfilters] * gcn_layer
    for li in range(1 + gcn_layer):
        cin = cins[li]
        w = kaiming_normal(keys[2 + li], (K + 1, cin, nfilters), fan_in=cin * nfilters)
        b = jnp.zeros((1, nfilters), dtype=jnp.float32)
        cheb_params.append((w, b))

    # hidden2label MLP: Linear(nodes, nhid) -> Linear(nhid, nhid//4) -> Linear(nhid//4, nclass)
    w1 = kaiming_normal(keys[6], (nodes, nhid), fan_in=nodes)
    b1 = 0.01 * jax.random.normal(keys[7], (1, nhid), dtype=jnp.float32)
    w2 = kaiming_normal(keys[8], (nhid, nhid // 4), fan_in=nhid)
    b2 = 0.01 * jax.random.normal(keys[9], (1, nhid // 4), dtype=jnp.float32)
    w3 = kaiming_normal(keys[10], (nhid // 4, nclass), fan_in=nhid // 4)
    b3 = 0.01 * jax.random.normal(keys[11], (1, nclass), dtype=jnp.float32)
    mlp_params = (w1, b1, w2, b2, w3, b3)

    fwd = jax.jit(chebnet_forward)
    y = fwd(inputs, adj, cheb_params, mlp_params)
    y = jax.block_until_ready(y)
    assert y.shape == (batch, nclass)

    y_ref = jax.block_until_ready(reference_forward(inputs, adj, cheb_params, mlp_params))
    assert jnp.allclose(y, y_ref, atol=1e-3, rtol=1e-3), "kernel output mismatch vs reference"

    print("KERNEL_OK")
</pallas_src>

<mosaic_0001>
module attributes {stable_mosaic.version = 11 : i64} {
  func.func @chebnet_fused_kernel(%arg0: i32, %arg1: memref<16x16xf32, #tpu.memory_space<vmem>>, %arg2: memref<32x8xf32, #tpu.memory_space<vmem>>, %arg3: memref<8x16xf32, #tpu.memory_space<vmem>>, %arg4: memref<8x16xf32, #tpu.memory_space<vmem>>, %arg5: memref<1x16xf32, #tpu.memory_space<vmem>>, %arg6: memref<16x16xf32, #tpu.memory_space<vmem>>, %arg7: memref<16x16xf32, #tpu.memory_space<vmem>>, %arg8: memref<1x16xf32, #tpu.memory_space<vmem>>, %arg9: memref<16x16xf32, #tpu.memory_space<vmem>>, %arg10: memref<16x16xf32, #tpu.memory_space<vmem>>, %arg11: memref<1x16xf32, #tpu.memory_space<vmem>>, %arg12: memref<16x32xf32, #tpu.memory_space<vmem>>, %arg13: memref<1x32xf32, #tpu.memory_space<vmem>>, %arg14: memref<32x8xf32, #tpu.memory_space<vmem>>, %arg15: memref<1x8xf32, #tpu.memory_space<vmem>>, %arg16: memref<8x3xf32, #tpu.memory_space<vmem>>, %arg17: memref<1x3xf32, #tpu.memory_space<vmem>>, %arg18: memref<2x3xf32, #tpu.memory_space<vmem>>, %arg19: memref<2x16x16xf32, #tpu.memory_space<vmem>>) attributes {dimension_semantics = [#tpu.dimension_semantics<arbitrary>], iteration_bounds = array<i64: 1>, scalar_prefetch = 0 : i64, scratch_operands = 1 : i64, tpu.core_type = #tpu.core_type<tc>, window_params = [{pipeline_mode = #tpu.pipeline_mode<synchronous>, transform_indices = @transform_0, window_bounds = array<i64: 16, 16>}, {pipeline_mode = #tpu.pipeline_mode<synchronous>, transform_indices = @transform_1, window_bounds = array<i64: 32, 8>}, {pipeline_mode = #tpu.pipeline_mode<synchronous>, transform_indices = @transform_2, window_bounds = array<i64: 8, 16>}, {pipeline_mode = #tpu.pipeline_mode<synchronous>, transform_indices = @transform_3, window_bounds = array<i64: 8, 16>}, {pipeline_mode = #tpu.pipeline_mode<synchronous>, transform_indices = @transform_4, window_bounds = array<i64: 1, 16>}, {pipeline_mode = #tpu.pipeline_mode<synchronous>, transform_indices = @transform_5, window_bounds = array<i64: 16, 16>}, {pipeline_mode = #tpu.pipeline_mode<synchronous>, transform_indices = @transform_6, window_bounds = array<i64: 16, 16>}, {pipeline_mode = #tpu.pipeline_mode<synchronous>, transform_indices = @transform_7, window_bounds = array<i64: 1, 16>}, {pipeline_mode = #tpu.pipeline_mode<synchronous>, transform_indices = @transform_8, window_bounds = array<i64: 16, 16>}, {pipeline_mode = #tpu.pipeline_mode<synchronous>, transform_indices = @transform_9, window_bounds = array<i64: 16, 16>}, {pipeline_mode = #tpu.pipeline_mode<synchronous>, transform_indices = @transform_10, window_bounds = array<i64: 1, 16>}, {pipeline_mode = #tpu.pipeline_mode<synchronous>, transform_indices = @transform_11, window_bounds = array<i64: 16, 32>}, {pipeline_mode = #tpu.pipeline_mode<synchronous>, transform_indices = @transform_12, window_bounds = array<i64: 1, 32>}, {pipeline_mode = #tpu.pipeline_mode<synchronous>, transform_indices = @transform_13, window_bounds = array<i64: 32, 8>}, {pipeline_mode = #tpu.pipeline_mode<synchronous>, transform_indices = @transform_14, window_bounds = array<i64: 1, 8>}, {pipeline_mode = #tpu.pipeline_mode<synchronous>, transform_indices = @transform_15, window_bounds = array<i64: 8, 3>}, {pipeline_mode = #tpu.pipeline_mode<synchronous>, transform_indices = @transform_16, window_bounds = array<i64: 1, 3>}, {pipeline_mode = #tpu.pipeline_mode<synchronous>, transform_indices = @transform_17, window_bounds = array<i64: 2, 3>}]} {
    %c0 = arith.constant 0 : index
    %c0_0 = arith.constant 0 : index
    %0 = vector.load %arg1[%c0, %c0_0] : memref<16x16xf32, #tpu.memory_space<vmem>>, vector<16x16xf32>
    %c0_1 = arith.constant 0 : index
    %c0_2 = arith.constant 0 : index
    %1 = vector.load %arg2[%c0_1, %c0_2] : memref<32x8xf32, #tpu.memory_space<vmem>>, vector<32x8xf32>
    %2 = vector.extract_strided_slice %1 {offsets = [0, 0], sizes = [16, 8], strides = [1, 1]} : vector<32x8xf32> to vector<16x8xf32>
    %cst = arith.constant dense<0.000000e+00> : vector<16x8xf32>
    %3 = tpu.matmul %0, %2, %cst {dimension_numbers = #tpu.dot_dimension_numbers<[1], [0], [0], [1], [0, 0, 1, 1], [], []>} : vector<16x16xf32>, vector<16x8xf32>, vector<16x8xf32> -> vector<16x8xf32>
    %4 = vector.extract_strided_slice %1 {offsets = [16, 0], sizes = [16, 8], strides = [1, 1]} : vector<32x8xf32> to vector<16x8xf32>
    %cst_3 = arith.constant dense<0.000000e+00> : vector<16x8xf32>
    %5 = tpu.matmul %0, %4, %cst_3 {dimension_numbers = #tpu.dot_dimension_numbers<[1], [0], [0], [1], [0, 0, 1, 1], [], []>} : vector<16x16xf32>, vector<16x8xf32>, vector<16x8xf32> -> vector<16x8xf32>
    %6 = tpu.concatenate %3, %5 in 0 : vector<16x8xf32>, vector<16x8xf32> -> vector<32x8xf32>
    %c0_4 = arith.constant 0 : index
    %c0_5 = arith.constant 0 : index
    %7 = vector.load %arg3[%c0_4, %c0_5] : memref<8x16xf32, #tpu.memory_space<vmem>>, vector<8x16xf32>
    %cst_6 = arith.constant dense<0.000000e+00> : vector<32x16xf32>
    %8 = tpu.matmul %1, %7, %cst_6 {dimension_numbers = #tpu.dot_dimension_numbers<[1], [0], [0], [1], [0, 0, 1, 1], [], []>} : vector<32x8xf32>, vector<8x16xf32>, vector<32x16xf32> -> vector<32x16xf32>
    %c0_7 = arith.constant 0 : index
    %c0_8 = arith.constant 0 : index
    %9 = vector.load %arg4[%c0_7, %c0_8] : memref<8x16xf32, #tpu.memory_space<vmem>>, vector<8x16xf32>
    %cst_9 = arith.constant dense<0.000000e+00> : vector<32x16xf32>
    %10 = tpu.matmul %6, %9, %cst_9 {dimension_numbers = #tpu.dot_dimension_numbers<[1], [0], [0], [1], [0, 0, 1, 1], [], []>} : vector<32x8xf32>, vector<8x16xf32>, vector<32x16xf32> -> vector<32x16xf32>
    %11 = arith.addf %8, %10 : vector<32x16xf32>
    %c0_10 = arith.constant 0 : index
    %c0_11 = arith.constant 0 : index
    %12 = vector.load %arg5[%c0_10, %c0_11] : memref<1x16xf32, #tpu.memory_space<vmem>>, vector<1x16xf32>
    %13 = vector.broadcast %12 : vector<1x16xf32> to vector<32x16xf32>
    %14 = arith.addf %11, %13 : vector<32x16xf32>
    %cst_12 = arith.constant 0.000000e+00 : f32
    %15 = vector.broadcast %cst_12 : f32 to vector<32x16xf32>
    %16 = arith.maximumf %14, %15 : vector<32x16xf32>
    %17 = vector.extract_strided_slice %16 {offsets = [0, 0], sizes = [16, 16], strides = [1, 1]} : vector<32x16xf32> to vector<16x16xf32>
    %cst_13 = arith.constant dense<0.000000e+00> : vector<16x16xf32>
    %18 = tpu.matmul %0, %17, %cst_13 {dimension_numbers = #tpu.dot_dimension_numbers<[1], [0], [0], [1], [0, 0, 1, 1], [], []>} : vector<16x16xf32>, vector<16x16xf32>, vector<16x16xf32> -> vector<16x16xf32>
    %19 = vector.extract_strided_slice %16 {offsets = [16, 0], sizes = [16, 16], strides = [1, 1]} : vector<32x16xf32> to vector<16x16xf32>
    %cst_14 = arith.constant dense<0.000000e+00> : vector<16x16xf32>
    %20 = tpu.matmul %0, %19, %cst_14 {dimension_numbers = #tpu.dot_dimension_numbers<[1], [0], [0], [1], [0, 0, 1, 1], [], []>} : vector<16x16xf32>, vector<16x16xf32>, vector<16x16xf32> -> vector<16x16xf32>
    %21 = tpu.concatenate %18, %20 in 0 : vector<16x16xf32>, vector<16x16xf32> -> vector<32x16xf32>
    %c0_15 = arith.constant 0 : index
    %c0_16 = arith.constant 0 : index
    %22 = vector.load %arg6[%c0_15, %c0_16] : memref<16x16xf32, #tpu.memory_space<vmem>>, vector<16x16xf32>
    %cst_17 = arith.constant dense<0.000000e+00> : vector<32x16xf32>
    %23 = tpu.matmul %16, %22, %cst_17 {dimension_numbers = #tpu.dot_dimension_numbers<[1], [0], [0], [1], [0, 0, 1, 1], [], []>} : vector<32x16xf32>, vector<16x16xf32>, vector<32x16xf32> -> vector<32x16xf32>
    %c0_18 = arith.constant 0 : index
    %c0_19 = arith.constant 0 : index
    %24 = vector.load %arg7[%c0_18, %c0_19] : memref<16x16xf32, #tpu.memory_space<vmem>>, vector<16x16xf32>
    %cst_20 = arith.constant dense<0.000000e+00> : vector<32x16xf32>
    %25 = tpu.matmul %21, %24, %cst_20 {dimension_numbers = #tpu.dot_dimension_numbers<[1], [0], [0], [1], [0, 0, 1, 1], [], []>} : vector<32x16xf32>, vector<16x16xf32>, vector<32x16xf32> -> vector<32x16xf32>
    %26 = arith.addf %23, %25 : vector<32x16xf32>
    %c0_21 = arith.constant 0 : index
    %c0_22 = arith.constant 0 : index
    %27 = vector.load %arg8[%c0_21, %c0_22] : memref<1x16xf32, #tpu.memory_space<vmem>>, vector<1x16xf32>
    %28 = vector.broadcast %27 : vector<1x16xf32> to vector<32x16xf32>
    %29 = arith.addf %26, %28 : vector<32x16xf32>
    %cst_23 = arith.constant 0.000000e+00 : f32
    %30 = vector.broadcast %cst_23 : f32 to vector<32x16xf32>
    %31 = arith.maximumf %29, %30 : vector<32x16xf32>
    %32 = vector.extract_strided_slice %31 {offsets = [0, 0], sizes = [16, 16], strides = [1, 1]} : vector<32x16xf32> to vector<16x16xf32>
    %cst_24 = arith.constant dense<0.000000e+00> : vector<16x16xf32>
    %33 = tpu.matmul %0, %32, %cst_24 {dimension_numbers = #tpu.dot_dimension_numbers<[1], [0], [0], [1], [0, 0, 1, 1], [], []>} : vector<16x16xf32>, vector<16x16xf32>, vector<16x16xf32> -> vector<16x16xf32>
    %34 = vector.extract_strided_slice %31 {offsets = [16, 0], sizes = [16, 16], strides = [1, 1]} : vector<32x16xf32> to vector<16x16xf32>
    %cst_25 = arith.constant dense<0.000000e+00> : vector<16x16xf32>
    %35 = tpu.matmul %0, %34, %cst_25 {dimension_numbers = #tpu.dot_dimension_numbers<[1], [0], [0], [1], [0, 0, 1, 1], [], []>} : vector<16x16xf32>, vector<16x16xf32>, vector<16x16xf32> -> vector<16x16xf32>
    %36 = tpu.concatenate %33, %35 in 0 : vector<16x16xf32>, vector<16x16xf32> -> vector<32x16xf32>
    %c0_26 = arith.constant 0 : index
    %c0_27 = arith.constant 0 : index
    %37 = vector.load %arg9[%c0_26, %c0_27] : memref<16x16xf32, #tpu.memory_space<vmem>>, vector<16x16xf32>
    %cst_28 = arith.constant dense<0.000000e+00> : vector<32x16xf32>
    %38 = tpu.matmul %31, %37, %cst_28 {dimension_numbers = #tpu.dot_dimension_numbers<[1], [0], [0], [1], [0, 0, 1, 1], [], []>} : vector<32x16xf32>, vector<16x16xf32>, vector<32x16xf32> -> vector<32x16xf32>
    %c0_29 = arith.constant 0 : index
    %c0_30 = arith.constant 0 : index
    %39 = vector.load %arg10[%c0_29, %c0_30] : memref<16x16xf32, #tpu.memory_space<vmem>>, vector<16x16xf32>
    %cst_31 = arith.constant dense<0.000000e+00> : vector<32x16xf32>
    %40 = tpu.matmul %36, %39, %cst_31 {dimension_numbers = #tpu.dot_dimension_numbers<[1], [0], [0], [1], [0, 0, 1, 1], [], []>} : vector<32x16xf32>, vector<16x16xf32>, vector<32x16xf32> -> vector<32x16xf32>
    %41 = arith.addf %38, %40 : vector<32x16xf32>
    %c0_32 = arith.constant 0 : index
    %c0_33 = arith.constant 0 : index
    %42 = vector.load %arg11[%c0_32, %c0_33] : memref<1x16xf32, #tpu.memory_space<vmem>>, vector<1x16xf32>
    %43 = vector.broadcast %42 : vector<1x16xf32> to vector<32x16xf32>
    %44 = arith.addf %41, %43 : vector<32x16xf32>
    %cst_34 = arith.constant 0.000000e+00 : f32
    %45 = vector.broadcast %cst_34 : f32 to vector<32x16xf32>
    %46 = arith.maximumf %44, %45 : vector<32x16xf32>
    %47 = vector.extract_strided_slice %46 {offsets = [0, 0], sizes = [16, 16], strides = [1, 1]} : vector<32x16xf32> to vector<16x16xf32>
    %c0_35 = arith.constant 0 : index
    %c0_36 = arith.constant 0 : index
    %c0_37 = arith.constant 0 : index
    %48 = vector.load %arg19[%c0_35, %c0_36, %c0_37] : memref<2x16x16xf32, #tpu.memory_space<vmem>>, vector<1x16x16xf32>
    %49 = vector.shape_cast %48 : vector<1x16x16xf32> to vector<16x16xf32>
    %50 = vector.shape_cast %47 : vector<16x16xf32> to vector<1x16x16xf32>
    tpu.vector_store %arg19[%c0_35, %c0_36, %c0_37], %50 {strides = array<i32>} : memref<2x16x16xf32, #tpu.memory_space<vmem>>, vector<1x16x16xf32>,
    %51 = vector.extract_strided_slice %46 {offsets = [16, 0], sizes = [16, 16], strides = [1, 1]} : vector<32x16xf32> to vector<16x16xf32>
    %c1 = arith.constant 1 : index
    %c0_38 = arith.constant 0 : index
    %c0_39 = arith.constant 0 : index
    %52 = vector.load %arg19[%c1, %c0_38, %c0_39] : memref<2x16x16xf32, #tpu.memory_space<vmem>>, vector<1x16x16xf32>
    %53 = vector.shape_cast %52 : vector<1x16x16xf32> to vector<16x16xf32>
    %54 = vector.shape_cast %51 : vector<16x16xf32> to vector<1x16x16xf32>
    tpu.vector_store %arg19[%c1, %c0_38, %c0_39], %54 {strides = array<i32>} : memref<2x16x16xf32, #tpu.memory_space<vmem>>, vector<1x16x16xf32>,
    %c0_40 = arith.constant 0 : index
    %c0_41 = arith.constant 0 : index
    %c0_42 = arith.constant 0 : index
    %55 = vector.load %arg19[%c0_40, %c0_41, %c0_42] : memref<2x16x16xf32, #tpu.memory_space<vmem>>, vector<2x16x16xf32>
    %cst_43 = arith.constant dense<0xFF800000> : vector<2x16xf32>
    %56 = vector.multi_reduction <maximumf>, %55, %cst_43 [2] : vector<2x16x16xf32> to vector<2x16xf32>
    %c0_44 = arith.constant 0 : index
    %c0_45 = arith.constant 0 : index
    %57 = vector.load %arg12[%c0_44, %c0_45] : memref<16x32xf32, #tpu.memory_space<vmem>>, vector<16x32xf32>
    %cst_46 = arith.constant dense<0.000000e+00> : vector<2x32xf32>
    %58 = tpu.matmul %56, %57, %cst_46 {dimension_numbers = #tpu.dot_dimension_numbers<[1], [0], [0], [1], [0, 0, 1, 1], [], []>} : vector<2x16xf32>, vector<16x32xf32>, vector<2x32xf32> -> vector<2x32xf32>
    %c0_47 = arith.constant 0 : index
    %c0_48 = arith.constant 0 : index
    %59 = vector.load %arg13[%c0_47, %c0_48] : memref<1x32xf32, #tpu.memory_space<vmem>>, vector<1x32xf32>
    %60 = vector.broadcast %59 : vector<1x32xf32> to vector<2x32xf32>
    %61 = arith.addf %58, %60 : vector<2x32xf32>
    %cst_49 = arith.constant 0.000000e+00 : f32
    %62 = vector.broadcast %cst_49 : f32 to vector<2x32xf32>
    %63 = arith.maximumf %61, %62 : vector<2x32xf32>
    %c0_50 = arith.constant 0 : index
    %c0_51 = arith.constant 0 : index
    %64 = vector.load %arg14[%c0_50, %c0_51] : memref<32x8xf32, #tpu.memory_space<vmem>>, vector<32x8xf32>
    %cst_52 = arith.constant dense<0.000000e+00> : vector<2x8xf32>
    %65 = tpu.matmul %63, %64, %cst_52 {dimension_numbers = #tpu.dot_dimension_numbers<[1], [0], [0], [1], [0, 0, 1, 1], [], []>} : vector<2x32xf32>, vector<32x8xf32>, vector<2x8xf32> -> vector<2x8xf32>
    %c0_53 = arith.constant 0 : index
    %c0_54 = arith.constant 0 : index
    %66 = vector.load %arg15[%c0_53, %c0_54] : memref<1x8xf32, #tpu.memory_space<vmem>>, vector<1x8xf32>
    %67 = vector.broadcast %66 : vector<1x8xf32> to vector<2x8xf32>
    %68 = arith.addf %65, %67 : vector<2x8xf32>
    %cst_55 = arith.constant 0.000000e+00 : f32
    %69 = vector.broadcast %cst_55 : f32 to vector<2x8xf32>
    %70 = arith.maximumf %68, %69 : vector<2x8xf32>
    %c0_56 = arith.constant 0 : index
    %c0_57 = arith.constant 0 : index
    %71 = vector.load %arg16[%c0_56, %c0_57] : memref<8x3xf32, #tpu.memory_space<vmem>>, vector<8x3xf32>
    %cst_58 = arith.constant dense<0.000000e+00> : vector<2x3xf32>
    %72 = tpu.matmul %70, %71, %cst_58 {dimension_numbers = #tpu.dot_dimension_numbers<[1], [0], [0], [1], [0, 0, 1, 1], [], []>} : vector<2x8xf32>, vector<8x3xf32>, vector<2x3xf32> -> vector<2x3xf32>
    %c0_59 = arith.constant 0 : index
    %c0_60 = arith.constant 0 : index
    %73 = vector.load %arg17[%c0_59, %c0_60] : memref<1x3xf32, #tpu.memory_space<vmem>>, vector<1x3xf32>
    %74 = vector.broadcast %73 : vector<1x3xf32> to vector<2x3xf32>
    %75 = arith.addf %72, %74 : vector<2x3xf32>
    %c0_61 = arith.constant 0 : index
    %c0_62 = arith.constant 0 : index
    %76 = vector.load %arg18[%c0_61, %c0_62] : memref<2x3xf32, #tpu.memory_space<vmem>>, vector<2x3xf32>
    tpu.vector_store %arg18[%c0_61, %c0_62], %75 {strides = array<i32>} : memref<2x3xf32, #tpu.memory_space<vmem>>, vector<2x3xf32>,
    return
  }
  func.func @transform_0(%arg0: i32) -> (i32, i32) {
    %c0_i32 = arith.constant 0 : i32
    %c0_i32_0 = arith.constant 0 : i32
    %c0_i32_1 = arith.constant 0 : i32
    return %c0_i32, %c0_i32_0 : i32, i32
  }
  func.func @transform_1(%arg0: i32) -> (i32, i32) {
    %c0_i32 = arith.constant 0 : i32
    %c0_i32_0 = arith.constant 0 : i32
    %c0_i32_1 = arith.constant 0 : i32
    return %c0_i32, %c0_i32_0 : i32, i32
  }
  func.func @transform_2(%arg0: i32) -> (i32, i32) {
    %c0_i32 = arith.constant 0 : i32
    %c0_i32_0 = arith.constant 0 : i32
    %c0_i32_1 = arith.constant 0 : i32
    return %c0_i32, %c0_i32_0 : i32, i32
  }
  func.func @transform_3(%arg0: i32) -> (i32, i32) {
    %c0_i32 = arith.constant 0 : i32
    %c0_i32_0 = arith.constant 0 : i32
    %c0_i32_1 = arith.constant 0 : i32
    return %c0_i32, %c0_i32_0 : i32, i32
  }
  func.func @transform_4(%arg0: i32) -> (i32, i32) {
    %c0_i32 = arith.constant 0 : i32
    %c0_i32_0 = arith.constant 0 : i32
    %c0_i32_1 = arith.constant 0 : i32
    return %c0_i32, %c0_i32_0 : i32, i32
  }
  func.func @transform_5(%arg0: i32) -> (i32, i32) {
    %c0_i32 = arith.constant 0 : i32
    %c0_i32_0 = arith.constant 0 : i32
    %c0_i32_1 = arith.constant 0 : i32
    return %c0_i32, %c0_i32_0 : i32, i32
  }
  func.func @transform_6(%arg0: i32) -> (i32, i32) {
    %c0_i32 = arith.constant 0 : i32
    %c0_i32_0 = arith.constant 0 : i32
    %c0_i32_1 = arith.constant 0 : i32
    return %c0_i32, %c0_i32_0 : i32, i32
  }
  func.func @transform_7(%arg0: i32) -> (i32, i32) {
    %c0_i32 = arith.constant 0 : i32
    %c0_i32_0 = arith.constant 0 : i32
    %c0_i32_1 = arith.constant 0 : i32
    return %c0_i32, %c0_i32_0 : i32, i32
  }
  func.func @transform_8(%arg0: i32) -> (i32, i32) {
    %c0_i32 = arith.constant 0 : i32
    %c0_i32_0 = arith.constant 0 : i32
    %c0_i32_1 = arith.constant 0 : i32
    return %c0_i32, %c0_i32_0 : i32, i32
  }
  func.func @transform_9(%arg0: i32) -> (i32, i32) {
    %c0_i32 = arith.constant 0 : i32
    %c0_i32_0 = arith.constant 0 : i32
    %c0_i32_1 = arith.constant 0 : i32
    return %c0_i32, %c0_i32_0 : i32, i32
  }
  func.func @transform_10(%arg0: i32) -> (i32, i32) {
    %c0_i32 = arith.constant 0 : i32
    %c0_i32_0 = arith.constant 0 : i32
    %c0_i32_1 = arith.constant 0 : i32
    return %c0_i32, %c0_i32_0 : i32, i32
  }
  func.func @transform_11(%arg0: i32) -> (i32, i32) {
    %c0_i32 = arith.constant 0 : i32
    %c0_i32_0 = arith.constant 0 : i32
    %c0_i32_1 = arith.constant 0 : i32
    return %c0_i32, %c0_i32_0 : i32, i32
  }
  func.func @transform_12(%arg0: i32) -> (i32, i32) {
    %c0_i32 = arith.constant 0 : i32
    %c0_i32_0 = arith.constant 0 : i32
    %c0_i32_1 = arith.constant 0 : i32
    return %c0_i32, %c0_i32_0 : i32, i32
  }
  func.func @transform_13(%arg0: i32) -> (i32, i32) {
    %c0_i32 = arith.constant 0 : i32
    %c0_i32_0 = arith.constant 0 : i32
    %c0_i32_1 = arith.constant 0 : i32
    return %c0_i32, %c0_i32_0 : i32, i32
  }
  func.func @transform_14(%arg0: i32) -> (i32, i32) {
    %c0_i32 = arith.constant 0 : i32
    %c0_i32_0 = arith.constant 0 : i32
    %c0_i32_1 = arith.constant 0 : i32
    return %c0_i32, %c0_i32_0 : i32, i32
  }
  func.func @transform_15(%arg0: i32) -> (i32, i32) {
    %c0_i32 = arith.constant 0 : i32
    %c0_i32_0 = arith.constant 0 : i32
    %c0_i32_1 = arith.constant 0 : i32
    return %c0_i32, %c0_i32_0 : i32, i32
  }
  func.func @transform_16(%arg0: i32) -> (i32, i32) {
    %c0_i32 = arith.constant 0 : i32
    %c0_i32_0 = arith.constant 0 : i32
    %c0_i32_1 = arith.constant 0 : i32
    return %c0_i32, %c0_i32_0 : i32, i32
  }
  func.func @transform_17(%arg0: i32) -> (i32, i32) {
    %c0_i32 = arith.constant 0 : i32
    %c0_i32_0 = arith.constant 0 : i32
    %c0_i32_1 = arith.constant 0 : i32
    return %c0_i32, %c0_i32_0 : i32, i32
  }
}

</mosaic_0001>

<bundles_post_ra>
// kernel: chebnet_forward.1
= control target key start
LH: loop header
LB: loop body
LE: loop exit
PB: predicated region body
PF: predicated region fallthrough
CT: control target
= control target key end

     0   :  { %s963_s0 = inlined_call_operand.vmem [shape: f32[16,16], index: 0, kind: input, shape index: {}]   ;;  %s964_s1 = inlined_call_operand.vmem [shape: f32[32,8], index: 1, kind: input, shape index: {}]   ;;  %s965_s2 = inlined_call_operand.vmem [shape: f32[8,16], index: 2, kind: input, shape index: {}]   ;;  %s966_s3 = inlined_call_operand.vmem [shape: f32[8,16], index: 3, kind: input, shape index: {}]   ;;  %s967_s4 = inlined_call_operand.vmem [shape: f32[1,16], index: 4, kind: input, shape index: {}]   ;;  %s968_s5 = inlined_call_operand.vmem [shape: f32[16,16], index: 5, kind: input, shape index: {}]   ;;  %s969_s6 = inlined_call_operand.vmem [shape: f32[16,16], index: 6, kind: input, shape index: {}]   ;;  %s970_s7 = inlined_call_operand.vmem [shape: f32[1,16], index: 7, kind: input, shape index: {}]   ;;  %s971_s8 = inlined_call_operand.vmem [shape: f32[16,16], index: 8, kind: input, shape index: {}]   ;;  %s972_s9 = inlined_call_operand.vmem [shape: f32[16,16], index: 9, kind: input, shape index: {}]   ;;  %s973_s10 = inlined_call_operand.vmem [shape: f32[1,16], index: 10, kind: input, shape index: {}]   ;;  %s974_s11 = inlined_call_operand.vmem [shape: f32[16,32], index: 11, kind: input, shape index: {}]   ;;  %s975_s12 = inlined_call_operand.vmem [shape: f32[1,32], index: 12, kind: input, shape index: {}]   ;;  %s976_s13 = inlined_call_operand.vmem [shape: f32[32,8], index: 13, kind: input, shape index: {}]   ;;  %s977_s14 = inlined_call_operand.vmem [shape: f32[1,8], index: 14, kind: input, shape index: {}]   ;;  %s978_s15 = inlined_call_operand.vmem [shape: f32[8,3], index: 15, kind: input, shape index: {}]   ;;  %s979_s16 = inlined_call_operand.vmem [shape: f32[1,3], index: 16, kind: input, shape index: {}]   ;;  %s980_s17 = inlined_call_operand.hbm [shape: f32[2,3], index: 17, kind: output, shape index: {}]  }
   0x1   :  { %983 = sst [smem:[#allocation6_spill]] %s963_s0 }
   0x2   :  { %984 = sst [smem:[#allocation7_spill]] %s964_s1 }
   0x3   :  { %s985_s26 = sld [smem:[#allocation7_spill]]  ;;  %vm63_vm0 = vcmask 130048  }
   0x4   :  { %s986_s30 = sld [smem:[#allocation6_spill]] }
   0x9   :  { %v60_v0 = vld [vmem:[%s985_s26 + $0x8] sm:$0xff]  ;;  %v59_v1 = vld [vmem:[%s985_s26] sm:$0xff]  ;;  %v62_v3 = vld [vmem:[%s985_s26 + $0x18] sm:$0xff] }
   0xa   :  { %84 = vmatpush.msra.mxu0 %v60_v0  ;;  %v820_v2 = vld [vmem:[%s986_s30] sm:$0xff]  ;;  %v61_v4 = vld [vmem:[%s985_s26 + $0x10] sm:$0xff]  ;;  %107 = vmatpush.msra.mxu1 %v62_v3 }
   0xc   :  { %85 = vmatpush.msra.mxu0 %v59_v1  ;;  %108 = vmatpush.msra.mxu1 %v61_v4 }
   0xd   :  { %646 = vmatmul.msk.f32.vlgmr.msra.gmra.mxu0 %vm63_vm0, %v820_v2 }
   0xe   :  { %22 = vsyncpa [#allocation4], 0  ;;  %648 = vmatmul.msk.f32.vlgmr.msra.gmra.mxu1 %vm63_vm0, %v820_v2  ;;  %v835_v5 = vld [vmem:[%s986_s30 + $0x8] sm:$0xff]  ;;  %v117_v6 = vld [vmem:[%s966_s3] sm:$0xff]  ;;  %vm118_vm1 = vcmask 64512   ;;  %vm537_vm2 = vcmask 130112  }
   0xf   :  { %v116_v7 = vld [vmem:[%s965_s2] sm:$0xff]  ;;  %146 = vmatpush.msra.mxu2 %v117_v6  ;;  %v260_v25 = vld [vmem:[%s968_s5 + $0x8] sm:$0xff]  ;;  %vm542_vm3 = vcmask 1041409   ;;  %vm575_vm4 = vcmask 261120   ;;  %s720_s21 = smov [#allocation3]   ;;  %vm628_vm5 = vcmask 17408  }
  0x10   :  { %187 = vmatpush.msra.mxu3 %v116_v7  ;;  %v688_v16 = vld [vmem:[%s967_s4] ss:$0 sm:$0xff]  ;;  %v262_v27 = vld [vmem:[%s969_s6 + $0x8] sm:$0xff]  ;;  %s635_s22 = sshll.u32 %s720_s21, 4  ;;  %s636_s22 = int_to_ptr.vmem [resolvable:$true] %s635_s22 }
  0x11   :  { %654 = vmatmul.msk.f32.vlgmr.msra.gmra.mxu3 %vm118_vm1, %v59_v1  ;;  %v259_v26 = vld [vmem:[%s968_s5] sm:$0xff]  ;;  %289 = vmatpush.msrb.mxu2 %v262_v27  ;;  %v404_v62 = vld [vmem:[%s971_s8 + $0x8] sm:$0xff] }
  0x12   :  { %v261_v36 = vld [vmem:[%s969_s6] sm:$0xff] }
  0x13   :  { %290 = vmatpush.msrb.mxu2 %v261_v36  ;;  %v689_v45 = vld [vmem:[%s970_s7] ss:$0 sm:$0xff] }
  0x14   :  { %v403_v63 = vld [vmem:[%s971_s8] sm:$0xff] }
  0x15   :  { %647 = vmatmul.msk.f32.gmra.mxu0 %vm63_vm0, %v835_v5  ;;  %v405_v1 = vld [vmem:[%s972_s9] sm:$0xff] }
  0x16   :  { %649 = vmatmul.msk.f32.gmra.mxu1 %vm63_vm0, %v835_v5  ;;  %v690_v7 = vld [vmem:[%s973_s10] ss:$0 sm:$0xff] }
  0x17   :  { %v522_v36 = vld [vmem:[%s974_s11] sm:$0xff] }
  0x19   :  { %655 = vmatmul.msk.f32.gmra.mxu3 %vm118_vm1, %v60_v0  ;;  %v406_v0 = vld [vmem:[%s972_s9 + $0x8] sm:$0xff] }
  0x21   :  { %656 = vmatmul.msk.f32.gmra.mxu3 %vm118_vm1, %v61_v4 }
  0x29   :  { %657 = vmatmul.msk.f32.gmra.mxu3 %vm118_vm1, %v62_v3 }
  0x8a   :  { %v87_v8 = vpop.f32.mrf.mxu0 }
  0x8b   :  { %650 = vmatmul.msk.f32.vlgmr.msra.gmra.mxu2 %vm118_vm1, %v87_v8  ;;  %v110_v10 = vpop.f32.mrf.mxu1 }
  0x92   :  { %v90_v9 = vpop.f32.mrf.mxu0 }
  0x93   :  { %651 = vmatmul.msk.f32.gmra.mxu2 %vm118_vm1, %v90_v9  ;;  %v113_v11 = vpop.f32.mrf.mxu1 }
  0x94   :  { %v189_v12 = vpop.f32.mrf.mxu3 }
  0x9b   :  { %652 = vmatmul.msk.f32.gmra.mxu2 %vm118_vm1, %v110_v10 }
  0x9c   :  { %v192_v14 = vpop.f32.mrf.mxu3 }
  0xa3   :  { %653 = vmatmul.msk.f32.gmra.mxu2 %vm118_vm1, %v113_v11 }
  0xa4   :  { %v195_v21 = vpop.f32.mrf.mxu3 }
  0xac   :  { %v198_v28 = vpop.f32.mrf.mxu3 }
 0x10e   :  { %v148_v13 = vpop.f32.mrf.mxu2 }
 0x10f   :  { %v190_v15 = vadd.f32 %v189_v12, %v148_v13 }
 0x111   :  { %v205_v19 = vadd.f32 %v688_v16, %v190_v15 }
 0x113   :  { %v209_v23 = vmax.f32 %v205_v19, 0.0 }
 0x116   :  { %v151_v17 = vpop.f32.mrf.mxu2 }
 0x117   :  { %v193_v18 = vadd.f32 %v192_v14, %v151_v17 }
 0x119   :  { %v206_v20 = vadd.f32 %v688_v16, %v193_v18 }
 0x11b   :  { %v210_v22 = vmax.f32 %v206_v20, 0.0 }
 0x11d   :  { %227 = vmatpush.msrb.mxu0 %v210_v22  ;;  %685 = vmatpush.msrb.mxu3 %v210_v22 }
 0x11e   :  { %v154_v24 = vpop.f32.mrf.mxu2 }
 0x11f   :  { %228 = vmatpush.msrb.mxu0 %v209_v23  ;;  %686 = vmatpush.msrb.mxu3 %v209_v23  ;;  %v196_v29 = vadd.f32 %v195_v21, %v154_v24 }
 0x120   :  { %658 = vmatmul.msk.f32.vlgmr.msrb.gmra.mxu0 %vm63_vm0, %v820_v2  ;;  %659 = vmatmul.msk.f32.vlgmr.msrb.gmra.mxu3 %vm63_vm0, %v835_v5 }
 0x121   :  { %330 = vmatpush.msra.mxu3 %v260_v25  ;;  %v207_v33 = vadd.f32 %v688_v16, %v196_v29 }
 0x123   :  { %331 = vmatpush.msra.mxu3 %v259_v26  ;;  %v211_v35 = vmax.f32 %v207_v33, 0.0 }
 0x126   :  { %v157_v30 = vpop.f32.mrf.mxu2 }
 0x127   :  { %v199_v31 = vadd.f32 %v198_v28, %v157_v30 }
 0x128   :  { %666 = vmatmul.msk.f32.vlgmr.msra.gmra.mxu3 %vm63_vm0, %v209_v23 }
 0x129   :  { %v208_v32 = vadd.f32 %v688_v16, %v199_v31 }
 0x12b   :  { %v212_v34 = vmax.f32 %v208_v32, 0.0 }
 0x12d   :  { %250 = vmatpush.msrb.mxu1 %v212_v34 }
 0x12f   :  { %251 = vmatpush.msrb.mxu1 %v211_v35 }
 0x130   :  { %660 = vmatmul.msk.f32.vlgmr.msrb.gmra.mxu1 %vm63_vm0, %v820_v2  ;;  %667 = vmatmul.msk.f32.gmra.mxu3 %vm63_vm0, %v210_v22 }
 0x138   :  { %661 = vmatmul.msk.f32.gmra.mxu1 %vm63_vm0, %v835_v5  ;;  %668 = vmatmul.msk.f32.gmra.mxu3 %vm63_vm0, %v211_v35  ;;  %v523_v35 = vld [vmem:[%s974_s11 + $0x8] sm:$0xff] }
 0x139   :  { %560 = vmatpush.msra.mxu2 %v523_v35 }
 0x13b   :  { %561 = vmatpush.msra.mxu2 %v522_v36 }
 0x140   :  { %669 = vmatmul.msk.f32.gmra.mxu3 %vm63_vm0, %v212_v34 }
 0x19d   :  { %v230_v37 = vpop.f32.mrf.mxu0 }
 0x19e   :  { %662 = vmatmul.msk.f32.vlgmr.msrb.gmra.mxu2 %vm63_vm0, %v230_v37  ;;  %v570_v37 = vld [vmem:[%s976_s13 + $0x18] sm:$0xff] }
 0x19f   :  { %591 = vmatpush.msrb.mxu3 %v570_v37 }
 0x1a3   :  { %v233_v38 = vpop.f32.mrf.mxu3 }
 0x1a6   :  { %663 = vmatmul.msk.f32.gmra.mxu2 %vm63_vm0, %v233_v38 }
 0x1ab   :  { %v333_v41 = vpop.f32.mrf.mxu3 }
 0x1ad   :  { %v253_v39 = vpop.f32.mrf.mxu1 }
 0x1ae   :  { %664 = vmatmul.msk.f32.gmra.mxu2 %vm63_vm0, %v253_v39  ;;  %v532_v39 = vlaneseq }
 0x1b3   :  { %v336_v43 = vpop.f32.mrf.mxu3 }
 0x1b5   :  { %v256_v40 = vpop.f32.mrf.mxu1 }
 0x1b6   :  { %665 = vmatmul.msk.f32.gmra.mxu2 %vm63_vm0, %v256_v40 }
 0x1bb   :  { %v339_v51 = vpop.f32.mrf.mxu3 }
 0x1c3   :  { %v342_v55 = vpop.f32.mrf.mxu3 }
 0x221   :  { %v292_v42 = vpop.f32.mrf.mxu2 }
 0x222   :  { %v334_v44 = vadd.f32 %v333_v41, %v292_v42  ;;  %v533_v41 = vand.u32 127, %v532_v39 }
 0x224   :  { %v349_v48 = vadd.f32 %v689_v45, %v334_v44  ;;  %v535_v42 = vadd.s32 4294967288, %v533_v41 }
 0x226   :  { %v353_v52 = vmax.f32 %v349_v48, 0.0 }
 0x229   :  { %v295_v46 = vpop.f32.mrf.mxu2 }
 0x22a   :  { %v337_v47 = vadd.f32 %v336_v43, %v295_v46 }
 0x22c   :  { %v350_v49 = vadd.f32 %v689_v45, %v337_v47 }
 0x22e   :  { %v354_v50 = vmax.f32 %v350_v49, 0.0 }
 0x230   :  { %371 = vmatpush.msra.mxu0 %v354_v50 }
 0x231   :  { %v298_v53 = vpop.f32.mrf.mxu2 }
 0x232   :  { %372 = vmatpush.msra.mxu0 %v353_v52  ;;  %v340_v54 = vadd.f32 %v339_v51, %v298_v53  ;;  %v568_v53 = vld [vmem:[%s976_s13 + $0x8] sm:$0xff] }
 0x233   :  { %670 = vmatmul.msk.f32.vlgmr.msra.gmra.mxu0 %vm63_vm0, %v820_v2 }
 0x234   :  { %v351_v58 = vadd.f32 %v689_v45, %v340_v54  ;;  %433 = vmatpush.msrb.mxu0 %v406_v0  ;;  %v567_v54 = vld [vmem:[%s976_s13] sm:$0xff] }
 0x235   :  { %v693_v0 = vld [vmem:[%s979_s16] ss:$0 sm:$0xff] }
 0x236   :  { %v355_v61 = vmax.f32 %v351_v58, 0.0  ;;  %434 = vmatpush.msrb.mxu0 %v405_v1 }
 0x239   :  { %v301_v56 = vpop.f32.mrf.mxu2 }
 0x23a   :  { %v343_v57 = vadd.f32 %v342_v55, %v301_v56  ;;  %v691_v55 = vld [vmem:[%s975_s12] ss:$0 sm:$0xff] }
 0x23b   :  { %671 = vmatmul.msk.f32.gmra.mxu0 %vm63_vm0, %v835_v5 }
 0x23c   :  { %v352_v59 = vadd.f32 %v689_v45, %v343_v57 }
 0x23e   :  { %v356_v60 = vmax.f32 %v352_v59, 0.0  ;;  %v600_v59 = vld [vmem:[%s978_s15] sm:$0xff]  ;;  %s637_s15 = sshll.u32 %s980_s17, 4  ;;  %s638_s15 = int_to_ptr.hbm [resolvable:$true] %s637_s15 }
 0x23f   :  { %623 = vmatpush.msrb.mxu2 %v600_v59 }
 0x240   :  { %394 = vmatpush.msra.mxu1 %v356_v60 }
 0x242   :  { %395 = vmatpush.msra.mxu1 %v355_v61 }
 0x243   :  { %672 = vmatmul.msk.f32.vlgmr.msra.gmra.mxu1 %vm63_vm0, %v820_v2 }
 0x244   :  { %474 = vmatpush.msrb.mxu1 %v404_v62 }
 0x246   :  { %475 = vmatpush.msrb.mxu1 %v403_v63 }
 0x24b   :  { %673 = vmatmul.msk.f32.gmra.mxu1 %vm63_vm0, %v835_v5 }
 0x253   :  { %678 = vmatmul.msk.f32.vlgmr.msrb.gmra.mxu1 %vm63_vm0, %v353_v52  ;;  %v569_v52 = vld [vmem:[%s976_s13 + $0x10] sm:$0xff] }
 0x254   :  { %592 = vmatpush.msrb.mxu3 %v569_v52 }
 0x256   :  { %593 = vmatpush.msrb.mxu3 %v568_v53 }
 0x258   :  { %594 = vmatpush.msrb.mxu3 %v567_v54 }
 0x25b   :  { %679 = vmatmul.msk.f32.gmra.mxu1 %vm63_vm0, %v354_v50 }
 0x263   :  { %680 = vmatmul.msk.f32.gmra.mxu1 %vm63_vm0, %v355_v61 }
 0x26b   :  { %681 = vmatmul.msk.f32.gmra.mxu1 %vm63_vm0, %v356_v60  ;;  %v692_v60 = vld [vmem:[%s977_s14] ss:$0 sm:$0xff] }
 0x2b0   :  { %v374_v2 = vpop.f32.mrf.mxu0 }
 0x2b1   :  { %674 = vmatmul.msk.f32.vlgmr.msrb.gmra.mxu0 %vm63_vm0, %v374_v2 }
 0x2b8   :  { %v377_v3 = vpop.f32.mrf.mxu0 }
 0x2b9   :  { %675 = vmatmul.msk.f32.gmra.mxu0 %vm63_vm0, %v377_v3 }
 0x2c0   :  { %v397_v4 = vpop.f32.mrf.mxu1 }
 0x2c1   :  { %676 = vmatmul.msk.f32.gmra.mxu0 %vm63_vm0, %v397_v4 }
 0x2c8   :  { %v400_v5 = vpop.f32.mrf.mxu1 }
 0x2c9   :  { %677 = vmatmul.msk.f32.gmra.mxu0 %vm63_vm0, %v400_v5 }
 0x2d0   :  { %v477_v6 = vpop.f32.mrf.mxu1 }
 0x2d8   :  { %v480_v11 = vpop.f32.mrf.mxu1 }
 0x2e0   :  { %v483_v17 = vpop.f32.mrf.mxu1 }
 0x2e8   :  { %v486_v26 = vpop.f32.mrf.mxu1 }
 0x32e   :  { %v436_v8 = vpop.f32.mrf.mxu0 }
 0x32f   :  { %v478_v9 = vadd.f32 %v477_v6, %v436_v8 }
 0x331   :  { %v493_v10 = vadd.f32 %v690_v7, %v478_v9 }
 0x333   :  { %v497_v12 = vmax.f32 %v493_v10, 0.0 }
 0x335   :  { %501 = vst.msk [vmem:[#allocation2] sm:$0xff] %vm63_vm0, %v497_v12 }
 0x336   :  { %v439_v13 = vpop.f32.mrf.mxu0 }
 0x337   :  { %v481_v14 = vadd.f32 %v480_v11, %v439_v13 }
 0x339   :  { %v494_v15 = vadd.f32 %v690_v7, %v481_v14 }
 0x33b   :  { %v498_v16 = vmax.f32 %v494_v15, 0.0 }
 0x33c   :  { %v506_v18 = vld [vmem:[#allocation2] sm:$0xff] }
 0x33d   :  { %502 = vst.msk [vmem:[#allocation2 + $0x8] sm:$0xff] %vm63_vm0, %v498_v16  ;;  %v510_v19 = vsel %vm63_vm0, %v506_v18, -inf }
 0x33e   :  { %v442_v20 = vpop.f32.mrf.mxu0  ;;  %511 = vmax.xlane.f32.xlu0 %v510_v19 }
 0x33f   :  { %v484_v21 = vadd.f32 %v483_v17, %v442_v20 }
 0x341   :  { %v495_v22 = vadd.f32 %v690_v7, %v484_v21 }
 0x343   :  { %v499_v23 = vmax.f32 %v495_v22, 0.0 }
 0x344   :  { %v507_v24 = vld [vmem:[#allocation2 + $0x8] sm:$0xff] }
 0x345   :  { %504 = vst.msk [vmem:[#allocation2 + $0x10] sm:$0xff] %vm63_vm0, %v499_v23  ;;  %v513_v25 = vsel %vm63_vm0, %v507_v24, -inf }
 0x346   :  { %514 = vmax.xlane.f32.xlu0 %v513_v25  ;;  %v445_v27 = vpop.f32.mrf.mxu0 }
 0x347   :  { %v487_v28 = vadd.f32 %v486_v26, %v445_v27 }
 0x349   :  { %v496_v29 = vadd.f32 %v690_v7, %v487_v28 }
 0x34b   :  { %v500_v30 = vmax.f32 %v496_v29, 0.0 }
 0x34c   :  { %v508_v31 = vld [vmem:[#allocation2 + $0x10] sm:$0xff] }
 0x34d   :  { %505 = vst.msk [vmem:[#allocation2 + $0x18] sm:$0xff] %vm63_vm0, %v500_v30  ;;  %v516_v32 = vsel %vm63_vm0, %v508_v31, -inf }
 0x34e   :  { %517 = vmax.xlane.f32.xlu1 %v516_v32 }
 0x354   :  { %v509_v33 = vld [vmem:[#allocation2 + $0x18] sm:$0xff] }
 0x355   :  { %v519_v34 = vsel %vm63_vm0, %v509_v33, -inf }
 0x356   :  { %520 = vmax.xlane.f32.xlu1 %v519_v34 }
 0x3b1   :  { %v512_v38 = vpop.xlane.xlu0 %511 }
 0x3b2   :  { %v534_v46 = vperm.slane %v512_v38, %v533_v41 }
 0x3b9   :  { %v515_v43 = vpop.xlane.xlu0 %514 }
 0x3ba   :  { %v536_v44 = vperm.slane %v515_v43, %v535_v42 }
 0x3bc   :  { %v538_v49 = vsel %vm537_vm2, %v536_v44, %v534_v46 }
 0x3c1   :  { %v518_v40 = vpop.xlane.xlu1 %517 }
 0x3c2   :  { %v539_v47 = vperm.slane %v518_v40, %v533_v41 }
 0x3c9   :  { %v521_v45 = vpop.xlane.xlu1 %520 }
 0x3ca   :  { %v540_v48 = vperm.slane %v521_v45, %v535_v42 }
 0x3cc   :  { %v541_v50 = vsel %vm537_vm2, %v540_v48, %v539_v47 }
 0x3cd   :  { %v543_v51 = vsel %vm542_vm3, %v541_v50, %v538_v49 }
 0x3ce   :  { %682 = vmatmul.msk.f32.vlgmr.msra.gmra.mxu2 %vm63_vm0, %v543_v51 }
 0x451   :  { %v563_v56 = vpop.f32.mrf.mxu2 }
 0x452   :  { %v564_v57 = vadd.f32 %v691_v55, %v563_v56 }
 0x454   :  { %v566_v58 = vmax.f32 %v564_v57, 0.0 }
 0x456   :  { %683 = vmatmul.msk.f32.vlgmr.msrb.gmra.mxu3 %vm575_vm4, %v566_v58 }
 0x4d9   :  { %v596_v61 = vpop.f32.mrf.mxu3 }
 0x4da   :  { %v597_v62 = vadd.f32 %v692_v60, %v596_v61 }
 0x4dc   :  { %v599_v63 = vmax.f32 %v597_v62, 0.0 }
 0x4de   :  { %684 = vmatmul.msk.f32.vlgmr.msrb.gmra.mxu2 %vm118_vm1, %v599_v63 }
 0x561   :  { %v625_v1 = vpop.f32.mrf.mxu2 }
 0x562   :  { %v626_v2 = vadd.f32 %v693_v0, %v625_v1 }
 0x564   :  { %629 = vst.msk [vmem:[#allocation3] sm:$0x3] %vm628_vm5, %v626_v2 }
 0x565   :  { %640 = dma.vmem_to_hbm [thread:$0]  %s636_s22, 32, %s638_s15, [#allocation4]  }
 0x566   :  { %718 = dma.done.wait [#allocation4], 32  }
 0x567   :  { %719 = vsyncadd [#allocation4], 4294967264 }
 0x568   :  { %645 = vsyncpa [#allocation4], 1 }

</bundles_post_ra>
